<compile_context>
chip_gen: v7x
topology: tpu7x:2x2x1
jax: 0.10.0
libtpu: 0.0.40
codegen_flags: <defaults>
</compile_context>

<pallas_src>
import functools

import numpy as np

import jax
import jax.numpy as jnp
from jax.experimental import pallas as pl
from jax.experimental.pallas import tpu as pltpu


def _round_up(x, m):
    return -(-x // m) * m


def _conv_pool_relu_kernel(x_ref, w_ref, b_ref, o_ref, *, off_values, length_pad, coutp):
    # x_ref: (1, 4*cpad, lpad)            bf16 space-to-depth parity planes
    #        row (pr*2+pc)*cpad+ci, flat col i*Wp2+j  ==  xpad[ci, 2i+pr, 2j+pc]
    # w_ref: (4*coutp, n_shift*4*cpad)    bf16 quadrant-stacked zero-expanded weights
    # b_ref: (coutp, 1)                   f32 bias
    # o_ref: (1, coutp, length_pad)       f32 pooled+ReLU output ("wide" rows; the
    #                                     invalid columns/lanes are trimmed in glue)
    xq = x_ref[0]

    # Hoisted lane shifts: the only in-kernel data movement is |off_values| (=4 for
    # K=3) lane-shifted copies of the whole plane block, stacked on sublanes
    # (each copy is 4*cpad rows = whole (16,128)/(8,128) tiles -> cheap moves).
    s = jnp.concatenate([xq[:, o:o + length_pad] for o in off_values], axis=0)

    # One fused GEMM for all 4 pool quadrants: quadrants live on the sublane (M) axis
    # of the pre-expanded weight matrix, so no patch matrix and no lane concat.
    conv = jnp.dot(w_ref[...], s, preferred_element_type=jnp.float32)

    # MaxPool2d(2,2) == elementwise max over the 4 quadrant row-blocks (sublane-
    # aligned slices of the f32 accumulator).
    pooled = jnp.maximum(
        jnp.maximum(conv[0 * coutp:1 * coutp], conv[1 * coutp:2 * coutp]),
        jnp.maximum(conv[2 * coutp:3 * coutp], conv[3 * coutp:4 * coutp]))

    # Bias is constant per channel within a pool window -> adding after max is exact.
    o_ref[0] = jnp.maximum(pooled + b_ref[...], 0.0)      # ReLU, f32 epilogue


def conv_layer_forward(x_nchw, weight, bias, *, padding=1):
    """Forward of ConvLayer(size=(Cin, Cout, K), padding) with the module defaults:
    MaxPool2d(2, stride=2), ReLU, bn=False, dropout=False."""
    N, Cin, H, W = x_nchw.shape
    Cout, _, K, _ = weight.shape

    Hp0, Wp0 = H + 2 * padding, W + 2 * padding
    Hc, Wc = Hp0 - K + 1, Wp0 - K + 1          # conv output size (stride 1)
    Ho, Wo = Hc // 2, Wc // 2                  # after MaxPool2d(2, 2) (floor)
    Hp, Wp = Hp0 + Hp0 % 2, Wp0 + Wp0 % 2      # padded size made even for 2x2 split
    Hp2, Wp2 = Hp // 2, Wp // 2

    cpad = _round_up(Cin, 8)                   # sublane-tile-padded channels
    coutp = _round_up(Cout, 8)                 # sublane-aligned output channels

    length = Ho * Wp2                          # "wide" pooled row length
    length_pad = _round_up(length, 128)        # lane-dense output / GEMM N dim

    # Only (K//2+1)^2 lane offsets are ever needed (2x2 pool, stride-1 conv).
    noff = K // 2 + 1
    off_values = tuple(r * Wp2 + c for r in range(noff) for c in range(noff))
    n_shift = noff * noff
    depth = n_shift * 4 * cpad                 # GEMM contraction depth

    lpad = _round_up(max(Hp2 * Wp2, off_values[-1] + length_pad), 128)

    # --- glue: zero-pad (channels + spatial) and 2x2 space-to-depth; 1x repack, bf16.
    xpad = jnp.pad(x_nchw, ((0, 0), (0, cpad - Cin),
                            (padding, Hp - H - padding),
                            (padding, Wp - W - padding)))
    xq = xpad.reshape(N, cpad, Hp2, 2, Wp2, 2)
    xq = xq.transpose(0, 3, 5, 1, 2, 4).reshape(N, 4 * cpad, Hp2 * Wp2)
    xq = jnp.pad(xq, ((0, 0), (0, 0), (0, lpad - Hp2 * Wp2))).astype(jnp.bfloat16)

    # --- glue: quadrant-stacked, zero-expanded weights.
    # w_all[q*coutp+co, (o_idx*4+prc)*cpad+ci] = weight[co, ci, kh, kw] where, for pool
    # quadrant q=(r,c): a=r+kh, b=c+kw, o_idx=(a//2)*noff+(b//2), prc=(a%2)*2+(b%2).
    qmap = np.zeros((K, K, 4, n_shift, 4), np.float32)
    for r in (0, 1):
        for c in (0, 1):
            q = r * 2 + c
            for kh in range(K):
                for kw in range(K):
                    a, b = r + kh, c + kw
                    qmap[kh, kw, q, (a // 2) * noff + (b // 2), (a % 2) * 2 + (b % 2)] = 1.0
    w_all = jnp.einsum("oihw,hwqsp->qospi", weight, jnp.asarray(qmap))
    w_all = jnp.pad(w_all, ((0, 0), (0, coutp - Cout), (0, 0), (0, 0), (0, cpad - Cin)))
    w_all = w_all.reshape(4 * coutp, depth).astype(jnp.bfloat16)
    bf = jnp.pad(bias, (0, coutp - Cout)).reshape(coutp, 1).astype(jnp.float32)

    kernel = functools.partial(_conv_pool_relu_kernel,
                               off_values=off_values,
                               length_pad=length_pad,
                               coutp=coutp)

    out_wide = pl.pallas_call(
        kernel,
        out_shape=jax.ShapeDtypeStruct((N, coutp, length_pad), jnp.float32),
        grid_spec=pltpu.PrefetchScalarGridSpec(
            num_scalar_prefetch=0,
            grid=(N,),                                           # batch only; >=2-way
            in_specs=[
                pl.BlockSpec((1, 4 * cpad, lpad), lambda n: (n, 0, 0)),
                pl.BlockSpec((4 * coutp, depth), lambda n: (0, 0)),   # VMEM-resident
                pl.BlockSpec((coutp, 1), lambda n: (0, 0)),           # VMEM-resident
            ],
            out_specs=pl.BlockSpec((1, coutp, length_pad), lambda n: (n, 0, 0)),
        ),
        compiler_params=pltpu.CompilerParams(
            dimension_semantics=("parallel",),
            allow_input_fusion=[True, False, False],   # fuse the xq repack glue
        ),
    )(xq, w_all, bf)

    # glue: drop padded channels / padded lanes / invalid "wide" columns -> NCHW.
    return out_wide[:, :Cout, :length].reshape(N, Cout, Ho, Wp2)[:, :, :, :Wo]


def _reference(x, weight, bias, *, padding=1):
    conv = jax.lax.conv_general_dilated(
        x, weight, window_strides=(1, 1),
        padding=[(padding, padding), (padding, padding)],
        dimension_numbers=("NCHW", "OIHW", "NCHW"),
        precision=jax.lax.Precision.HIGHEST)
    conv = conv + bias.reshape(1, -1, 1, 1)
    pooled = jax.lax.reduce_window(conv, -jnp.inf, jax.lax.max,
                                   (1, 1, 2, 2), (1, 1, 2, 2), "VALID")
    return jnp.maximum(pooled, 0.0)


if __name__ == "__main__":
    # ConvLayer(size=(4, 32, 3), padding=1) with defaults: MaxPool2d(2,2) + ReLU
    N, Cin, Cout, K, H, W = 2, 4, 32, 3, 16, 16

    key = jax.random.PRNGKey(0)
    kx, kw, kb = jax.random.split(key, 3)
    x = jax.random.normal(kx, (N, Cin, H, W), dtype=jnp.float32)
    # deterministic synthetic parameters (shapes as nn.Conv2d(4, 32, 3))
    fan_in = Cin * K * K
    bound = 1.0 / (fan_in ** 0.5)
    weight = jax.random.uniform(kw, (Cout, Cin, K, K), jnp.float32, -bound, bound)
    bias = jax.random.uniform(kb, (Cout,), jnp.float32, -bound, bound)

    fwd = jax.jit(functools.partial(conv_layer_forward, padding=1))
    out = jax.block_until_ready(fwd(x, weight, bias))
    ref = jax.block_until_ready(_reference(x, weight, bias, padding=1))

    assert out.shape == ref.shape == (N, Cout, H // 2, W // 2)
    # bf16 operands on the MXU (f32 accumulation) vs f32 reference -> loose-ish tol.
    assert jnp.allclose(out, ref, rtol=2e-2, atol=2e-2), \
        float(jnp.max(jnp.abs(out - ref)))

    print("KERNEL_OK")
</pallas_src>

<mosaic_0001>
module attributes {stable_mosaic.version = 11 : i64} {
  func.func @_conv_pool_relu_kernel(%arg0: i32, %arg1: memref<1x32x256xbf16, #tpu.memory_space<vmem>>, %arg2: memref<128x128xbf16, #tpu.memory_space<vmem>>, %arg3: memref<32x1xf32, #tpu.memory_space<vmem>>, %arg4: memref<1x32x128xf32, #tpu.memory_space<vmem>>) attributes {dimension_semantics = [#tpu.dimension_semantics<parallel>], iteration_bounds = array<i64: 2>, scalar_prefetch = 0 : i64, scratch_operands = 0 : i64, tpu.core_type = #tpu.core_type<tc>, window_params = [{transform_indices = @transform_0, window_bounds = array<i64: 1, 32, 256>}, {pipeline_mode = #tpu.pipeline_mode<synchronous>, transform_indices = @transform_1, window_bounds = array<i64: 128, 128>}, {pipeline_mode = #tpu.pipeline_mode<synchronous>, transform_indices = @transform_2, window_bounds = array<i64: 32, 1>}, {transform_indices = @transform_3, window_bounds = array<i64: 1, 32, 128>}]} {
    %c0 = arith.constant 0 : index
    %c0_0 = arith.constant 0 : index
    %c0_1 = arith.constant 0 : index
    %0 = vector.load %arg1[%c0, %c0_0, %c0_1] : memref<1x32x256xbf16, #tpu.memory_space<vmem>>, vector<1x32x256xbf16>
    %1 = vector.shape_cast %0 : vector<1x32x256xbf16> to vector<32x256xbf16>
    %2 = vector.extract_strided_slice %1 {offsets = [0, 0], sizes = [32, 128], strides = [1, 1]} : vector<32x256xbf16> to vector<32x128xbf16>
    %3 = vector.extract_strided_slice %1 {offsets = [0, 1], sizes = [32, 128], strides = [1, 1]} : vector<32x256xbf16> to vector<32x128xbf16>
    %4 = vector.extract_strided_slice %1 {offsets = [0, 9], sizes = [32, 128], strides = [1, 1]} : vector<32x256xbf16> to vector<32x128xbf16>
    %5 = vector.extract_strided_slice %1 {offsets = [0, 10], sizes = [32, 128], strides = [1, 1]} : vector<32x256xbf16> to vector<32x128xbf16>
    %6 = tpu.concatenate %2, %3, %4, %5 in 0 : vector<32x128xbf16>, vector<32x128xbf16>, vector<32x128xbf16>, vector<32x128xbf16> -> vector<128x128xbf16>
    %c0_2 = arith.constant 0 : index
    %c0_3 = arith.constant 0 : index
    %7 = vector.load %arg2[%c0_2, %c0_3] : memref<128x128xbf16, #tpu.memory_space<vmem>>, vector<128x128xbf16>
    %cst = arith.constant dense<0.000000e+00> : vector<128x128xf32>
    %8 = tpu.matmul %7, %6, %cst {dimension_numbers = #tpu.dot_dimension_numbers<[1], [0], [0], [1], [0, 0, 1, 1], [], []>} : vector<128x128xbf16>, vector<128x128xbf16>, vector<128x128xf32> -> vector<128x128xf32>
    %9 = vector.extract_strided_slice %8 {offsets = [0, 0], sizes = [32, 128], strides = [1, 1]} : vector<128x128xf32> to vector<32x128xf32>
    %10 = vector.extract_strided_slice %8 {offsets = [32, 0], sizes = [32, 128], strides = [1, 1]} : vector<128x128xf32> to vector<32x128xf32>
    %11 = arith.maximumf %9, %10 : vector<32x128xf32>
    %12 = vector.extract_strided_slice %8 {offsets = [64, 0], sizes = [32, 128], strides = [1, 1]} : vector<128x128xf32> to vector<32x128xf32>
    %13 = vector.extract_strided_slice %8 {offsets = [96, 0], sizes = [32, 128], strides = [1, 1]} : vector<128x128xf32> to vector<32x128xf32>
    %14 = arith.maximumf %12, %13 : vector<32x128xf32>
    %15 = arith.maximumf %11, %14 : vector<32x128xf32>
    %c0_4 = arith.constant 0 : index
    %c0_5 = arith.constant 0 : index
    %16 = vector.load %arg3[%c0_4, %c0_5] : memref<32x1xf32, #tpu.memory_space<vmem>>, vector<32x1xf32>
    %17 = vector.broadcast %16 : vector<32x1xf32> to vector<32x128xf32>
    %18 = arith.addf %15, %17 : vector<32x128xf32>
    %cst_6 = arith.constant 0.000000e+00 : f32
    %19 = vector.broadcast %cst_6 : f32 to vector<32x128xf32>
    %20 = arith.maximumf %18, %19 : vector<32x128xf32>
    %c0_7 = arith.constant 0 : index
    %c0_8 = arith.constant 0 : index
    %c0_9 = arith.constant 0 : index
    %21 = vector.load %arg4[%c0_7, %c0_8, %c0_9] : memref<1x32x128xf32, #tpu.memory_space<vmem>>, vector<1x32x128xf32>
    %22 = vector.shape_cast %21 : vector<1x32x128xf32> to vector<32x128xf32>
    %23 = vector.shape_cast %20 : vector<32x128xf32> to vector<1x32x128xf32>
    tpu.vector_store %arg4[%c0_7, %c0_8, %c0_9], %23 {strides = array<i32>} : memref<1x32x128xf32, #tpu.memory_space<vmem>>, vector<1x32x128xf32>,
    return
  }
  func.func @transform_0(%arg0: i32) -> (i32, i32, i32) {
    %c0_i32 = arith.constant 0 : i32
    %c0_i32_0 = arith.constant 0 : i32
    %c0_i32_1 = arith.constant 0 : i32
    return %arg0, %c0_i32, %c0_i32_0 : i32, i32, i32
  }
  func.func @transform_1(%arg0: i32) -> (i32, i32) {
    %c0_i32 = arith.constant 0 : i32
    %c0_i32_0 = arith.constant 0 : i32
    %c0_i32_1 = arith.constant 0 : i32
    return %c0_i32, %c0_i32_0 : i32, i32
  }
  func.func @transform_2(%arg0: i32) -> (i32, i32) {
    %c0_i32 = arith.constant 0 : i32
    %c0_i32_0 = arith.constant 0 : i32
    %c0_i32_1 = arith.constant 0 : i32
    return %c0_i32, %c0_i32_0 : i32, i32
  }
  func.func @transform_3(%arg0: i32) -> (i32, i32, i32) {
    %c0_i32 = arith.constant 0 : i32
    %c0_i32_0 = arith.constant 0 : i32
    %c0_i32_1 = arith.constant 0 : i32
    return %arg0, %c0_i32, %c0_i32_0 : i32, i32, i32
  }
}

</mosaic_0001>

<bundles_post_ra>
// kernel: conv_layer_forward.2
= control target key start
LH: loop header
LB: loop body
LE: loop exit
PB: predicated region body
PF: predicated region fallthrough
CT: control target
= control target key end

     0   :  { %s785_s17 = smov 0   ;;  %s848_s0 = inlined_call_operand.vmem [shape: bf16[128,128], index: 0, kind: input, shape index: {}]   ;;  %s849_s1 = inlined_call_operand.vmem [shape: f32[32,1], index: 1, kind: input, shape index: {}]   ;;  %s850_s2 = inlined_call_operand.vmem [shape: bf16[2,32,81], index: 2, kind: input, shape index: {}]   ;;  %s851_s3 = inlined_call_operand.<no memory space> [shape: bf16[], index: 3, kind: input, shape index: {}]   ;;  %s852_s4 = inlined_call_operand.vmem [shape: f32[2,32,128], index: 4, kind: output, shape index: {}]  }
   0x1   :  { %v9_v0 = vstv %s851_s3 }
   0x2   :  { %v783_v1 = vunpack.i.l.bf16 %v9_v0 }
   0x3 LB: > { %s605_s18 = sadd.s32 4294967295, %s749_s17   ;;  %p609_p0 = scmp.ge.s32.totalorder %s749_s17, 1  ;;  %s749_s17 = sphi %s785_s17, %s19_s17  }
   0x4   : > { %p143_p1 = scmp.lt.s32.totalorder %s749_s17, 3 }
   0x6   : > { %p144_p2 = pnand %p609_p0, %p143_p1 }
   0x7   : > { %v655_v2 = vpack.c.bf16 (!%p144_p2), %v783_v1, %v783_v1  ;;  %p167_p3 = scmp.lt.s32.totalorder (!%p144_p2), %s605_s18, 1  ;;  %v189_v3 = vlaneseq (!%p144_p2)  ;;  %s751_s3 = smov (!%p144_p2), 127   ;;  %v735_v17 = vld [vmem:[%s848_s0] sm:$0xff] (!%p144_p2)   ;;  %v515_v19 = vld [vmem:[%s849_s1 + $0x8] sm:$0xff] (!%p144_p2)  ;;  %v754_v21 = vmov (!%p144_p2), 0   ;;  %v516_v22 = vld [vmem:[%s849_s1 + $0x10] sm:$0xff] (!%p144_p2) }
   0x8   : > { %147 = sbr.rel (%p144_p2) target bundleno = 400 (0x190), region = 32  ;;  %s752_s23 = smov (!%p144_p2), 119   ;;  %v736_v18 = vld [vmem:[%s848_s0 + $0x20] sm:$0xff] (!%p144_p2)   ;;  %689 = vmatprep.mubr.bf16.mxu0 (!%p144_p2), %v735_v17  ;;  %734 = vset.pattern.permute.xlu1 (!%p144_p2), %v754_v21  ;;  %v517_v23 = vld [vmem:[%s849_s1 + $0x18] sm:$0xff] (!%p144_p2)  ;;  %vm310_vm1 = vcmask (!%p144_p2), 1039360   ;;  %vm323_vm2 = vcmask (!%p144_p2), 973824  }
   0x9   : > { %308 = vrot.lane.b32.xlu1 (!%p144_p2), %v655_v2, %s751_s3  ;;  %v190_v4 = vand.u32 (!%p144_p2), 127, %v189_v3  ;;  %s753_s24 = smov (!%p144_p2), 118   ;;  %697 = vmatprep.mubr.bf16.mxu1 (!%p144_p2), %v736_v18  ;;  %v514_v20 = vld [vmem:[%s849_s1] sm:$0xff] (!%p144_p2)  ;;  %vm336_vm3 = vcmask (!%p144_p2), 965632   ;;  %v737_v42 = vld [vmem:[%s848_s0 + $0x8] sm:$0xff] (!%p144_p2)   ;;  %v739_v44 = vld [vmem:[%s848_s0 + $0x10] sm:$0xff] (!%p144_p2)  }
   0xa   : > { %733 = vset.pattern.permute.xlu0 (!%p144_p2), %v754_v21  ;;  %v738_v43 = vld [vmem:[%s848_s0 + $0x28] sm:$0xff] (!%p144_p2)   ;;  %v740_v45 = vld [vmem:[%s848_s0 + $0x30] sm:$0xff] (!%p144_p2)   ;;  %v741_v46 = vld [vmem:[%s848_s0 + $0x18] sm:$0xff] (!%p144_p2)  }
   0xb   : > { %vm192_vm0 = vcmp.lt.s32.totalorder (!%p144_p2), %v190_v4, 81  ;;  %v742_v47 = vld [vmem:[%s848_s0 + $0x38] sm:$0xff] (!%p144_p2)  }
   0xf   : > { %s854_s18 = smov (!%p167_p3, %s605_s18), 1 }
  0x10   : > { %s631_s19 = sshll.u32 %s854_s18, 4 }
  0x11   : > { %s171_s22 = scalar_lea.vmem %s850_s2, %s631_s19 }
  0x12   : > { %v186_v5 = vld [vmem:[%s171_s22] sm:$0xff]   ;;  %v615_v6 = vld [vmem:[%s171_s22 + $0x8] sm:$0xff]  }
  0x13   : > { %v187_v7 = vunpack.c.l.bf16 %v186_v5  ;;  %v212_v8 = vunpack.c.h.bf16 %v186_v5  ;;  %v238_v9 = vunpack.c.l.bf16 %v615_v6  ;;  %v264_v10 = vunpack.c.h.bf16 %v615_v6 }
  0x15   : > { %v193_v11 = vsel %vm192_vm0, %v187_v7, %v783_v1  ;;  %v218_v12 = vsel %vm192_vm0, %v212_v8, %v783_v1  ;;  %v244_v13 = vsel %vm192_vm0, %v238_v9, %v783_v1  ;;  %v270_v14 = vsel %vm192_vm0, %v264_v10, %v783_v1 }
  0x16   : > { %v653_v15 = vpack.c.bf16 %v218_v12, %v193_v11  ;;  %v654_v16 = vpack.c.bf16 %v270_v14, %v244_v13 }
  0x18   : > { %302 = vrot.lane.b32.xlu0 %v653_v15, %s751_s3  ;;  %306 = vrot.lane.b32.xlu1 %v654_v16, %s751_s3 }
  0x19   : > { %673 = vmatprep.subr.bf16.mxu0 %v653_v15  ;;  %705 = vmatprep.subr.bf16.mxu1 %v653_v15 }
  0x1a   : > { %674 = vmatpush3.bf16.msra.mxu0 %v653_v15  ;;  %713 = vmatpush3.bf16.msra.mxu1 %v653_v15 }
  0x1b   : > { %675 = vmatprep.subr.bf16.mxu0 %v654_v16  ;;  %706 = vmatprep.subr.bf16.mxu1 %v654_v16 }
  0x1c   : > { %304 = vrot.lane.b32.xlu0 %v655_v2, %s751_s3  ;;  %317 = vrot.lane.b32.xlu1 %v655_v2, %s752_s23 }
  0x1e   : > { %676 = vmatpush3.bf16.msra.mxu0 %v654_v16  ;;  %714 = vmatpush3.bf16.msra.mxu1 %v654_v16 }
  0x20   : > { %315 = vrot.lane.b32.xlu0 %v653_v15, %s752_s23  ;;  %321 = vrot.lane.b32.xlu1 %v655_v2, %s752_s23 }
  0x24   : > { %319 = vrot.lane.b32.xlu0 %v654_v16, %s752_s23  ;;  %330 = vrot.lane.b32.xlu1 %v655_v2, %s753_s24 }
  0x28   : > { %328 = vrot.lane.b32.xlu0 %v653_v15, %s753_s24  ;;  %334 = vrot.lane.b32.xlu1 %v655_v2, %s753_s24 }
  0x2c   : > { %332 = vrot.lane.b32.xlu0 %v654_v16, %s753_s24  ;;  %525 = vperm.xlu1 %734, %v515_v19   ;;  %s632_s24 = sshll.u32 %s854_s18, 5 }
  0x2d   : > { %s176_s27 = scalar_lea.vmem %s852_s4, %s632_s24 }
  0x30   : > { %520 = vperm.xlu0 %733, %v514_v20   ;;  %530 = vperm.xlu1 %734, %v516_v22  }
  0x34   : > { %535 = vperm.xlu0 %733, %v517_v23  }
  0x7b   : > { %v309_v24 = vpop.permute.xlu1 %308 }
  0x8a   : > { %v303_v25 = vpop.permute.xlu0 %302  ;;  %v307_v26 = vpop.permute.xlu1 %306 }
  0x8b   : > { %v312_v30 = vsel %vm310_vm1, %v307_v26, %v309_v24 }
  0x8e   : > { %v305_v27 = vpop.permute.xlu0 %304  ;;  %v318_v28 = vpop.permute.xlu1 %317 }
  0x8f   : > { %v311_v29 = vsel %vm310_vm1, %v303_v25, %v305_v27 }
  0x90   : > { %677 = vmatprep.subr.bf16.mxu0 %v311_v29  ;;  %707 = vmatprep.subr.bf16.mxu1 %v311_v29 }
  0x91   : > { %678 = vmatpush3.bf16.msra.mxu0 %v311_v29  ;;  %715 = vmatpush3.bf16.msra.mxu1 %v311_v29 }
  0x92   : > { %679 = vmatprep.subr.bf16.mxu0 %v312_v30  ;;  %708 = vmatprep.subr.bf16.mxu1 %v312_v30  ;;  %v316_v31 = vpop.permute.xlu0 %315  ;;  %v322_v32 = vpop.permute.xlu1 %321 }
  0x93   : > { %v324_v33 = vsel %vm323_vm2, %v316_v31, %v318_v28 }
  0x95   : > { %680 = vmatpush3.bf16.msra.mxu0 %v312_v30  ;;  %716 = vmatpush3.bf16.msra.mxu1 %v312_v30 }
  0x96   : > { %681 = vmatprep.subr.bf16.mxu0 %v324_v33  ;;  %709 = vmatprep.subr.bf16.mxu1 %v324_v33  ;;  %v320_v34 = vpop.permute.xlu0 %319  ;;  %v331_v35 = vpop.permute.xlu1 %330 }
  0x97   : > { %v325_v36 = vsel %vm323_vm2, %v320_v34, %v322_v32 }
  0x99   : > { %682 = vmatpush3.bf16.msra.mxu0 %v324_v33  ;;  %717 = vmatpush3.bf16.msra.mxu1 %v324_v33 }
  0x9a   : > { %683 = vmatprep.subr.bf16.mxu0 %v325_v36  ;;  %710 = vmatprep.subr.bf16.mxu1 %v325_v36  ;;  %v329_v37 = vpop.permute.xlu0 %328  ;;  %v335_v39 = vpop.permute.xlu1 %334 }
  0x9b   : > { %v337_v38 = vsel %vm336_vm3, %v329_v37, %v331_v35 }
  0x9d   : > { %684 = vmatpush3.bf16.msra.mxu0 %v325_v36  ;;  %718 = vmatpush3.bf16.msra.mxu1 %v325_v36 }
  0x9e   : > { %685 = vmatprep.subr.bf16.mxu0 %v337_v38  ;;  %711 = vmatprep.subr.bf16.mxu1 %v337_v38  ;;  %v333_v40 = vpop.permute.xlu0 %332 }
  0x9f   : > { %v338_v41 = vsel %vm336_vm3, %v333_v40, %v335_v39 }
  0xa1   : > { %686 = vmatpush3.bf16.msra.mxu0 %v337_v38  ;;  %719 = vmatpush3.bf16.msra.mxu1 %v337_v38 }
  0xa2   : > { %687 = vmatprep.subr.bf16.mxu0 %v338_v41  ;;  %712 = vmatprep.subr.bf16.mxu1 %v338_v41 }
  0xa5   : > { %688 = vmatpush3.bf16.msra.mxu0 %v338_v41  ;;  %720 = vmatpush3.bf16.msra.mxu1 %v338_v41 }
  0xa8   : > { %690 = vmatmul.mubr.bf16.vlgmr.msra.gmra.mrb[0].mxu0 %v737_v42  ;;  %698 = vmatmul.mubr.bf16.vlgmr.msra.gmra.mrb[0].mxu1 %v738_v43 }
  0xa9   : > { %693 = vmatprep.mubr.bf16.mxu0 %v739_v44  ;;  %701 = vmatprep.mubr.bf16.mxu1 %v740_v45 }
  0xab   : > { %v526_v48 = vpop.permute.xlu1 %525 }
  0xaf   : > { %v521_v57 = vpop.permute.xlu0 %520  ;;  %v531_v58 = vpop.permute.xlu1 %530 }
  0xb0   : > { %694 = vmatmul.mubr.bf16.gmra.mrb[4].mxu0 %v741_v46  ;;  %702 = vmatmul.mubr.bf16.gmra.mrb[4].mxu1 %v742_v47 }
  0xb3   : > { %v536_v17 = vpop.permute.xlu0 %535 }
 0x17b   : > { %v691_v49 = vpop.f32.mrb[0].mxu0  ;;  %v699_v50 = vpop.f32.mrb[0].mxu1 }
 0x17c   : > { %v439_v51 = vpop.f32.mrb[1].mxu0  ;;  %v471_v52 = vpop.f32.mrb[1].mxu1 }
 0x17d   : > { %v692_v53 = vpop.f32.mrb[2].mxu0  ;;  %v700_v54 = vpop.f32.mrb[2].mxu1 }
 0x17e   : > { %v442_v55 = vpop.f32.mrb[3].mxu0  ;;  %v474_v56 = vpop.f32.mrb[3].mxu1 }
 0x183   : > { %v695_v59 = vpop.f32.mrb[4].mxu0  ;;  %v703_v60 = vpop.f32.mrb[4].mxu1 }
 0x184   : > { %v504_v61 = vmax.f32 %v691_v49, %v695_v59  ;;  %v508_v62 = vmax.f32 %v699_v50, %v703_v60  ;;  %v455_v63 = vpop.f32.mrb[5].mxu0  ;;  %v487_v0 = vpop.f32.mrb[5].mxu1 }
 0x185   : > { %v502_v2 = vmax.f32 %v439_v51, %v455_v63  ;;  %v506_v3 = vmax.f32 %v471_v52, %v487_v0  ;;  %v696_v4 = vpop.f32.mrb[6].mxu0  ;;  %v704_v5 = vpop.f32.mrb[6].mxu1 }
 0x186   : > { %v505_v6 = vmax.f32 %v692_v53, %v696_v4  ;;  %v509_v7 = vmax.f32 %v700_v54, %v704_v5  ;;  %v512_v8 = vmax.f32 %v504_v61, %v508_v62  ;;  %v458_v9 = vpop.f32.mrb[7].mxu0  ;;  %v490_v10 = vpop.f32.mrb[7].mxu1 }
 0x187   : > { %v510_v11 = vmax.f32 %v502_v2, %v506_v3  ;;  %v503_v12 = vmax.f32 %v442_v55, %v458_v9  ;;  %v507_v13 = vmax.f32 %v474_v56, %v490_v10 }
 0x188   : > { %v540_v14 = vadd.f32 %v531_v58, %v512_v8  ;;  %v513_v15 = vmax.f32 %v505_v6, %v509_v7 }
 0x189   : > { %v538_v16 = vadd.f32 %v521_v57, %v510_v11  ;;  %v511_v18 = vmax.f32 %v503_v12, %v507_v13 }
 0x18a   : > { %v544_v19 = vmax.f32 %v540_v14, 0.0  ;;  %v541_v20 = vadd.f32 %v536_v17, %v513_v15 }
 0x18b   : > { %v542_v21 = vmax.f32 %v538_v16, 0.0  ;;  %v539_v22 = vadd.f32 %v526_v48, %v511_v18 }
 0x18c   : > { %548 = vst [vmem:[%s176_s27 + $0x10] sm:$0xff] %v544_v19  ;;  %v545_v23 = vmax.f32 %v541_v20, 0.0 }
 0x18d   : > { %546 = vst [vmem:[%s176_s27] sm:$0xff] %v542_v21  ;;  %v543_v24 = vmax.f32 %v539_v22, 0.0 }
 0x18e   : > { %549 = vst [vmem:[%s176_s27 + $0x18] sm:$0xff] %v545_v23 }
 0x18f   : > { %547 = vst [vmem:[%s176_s27 + $0x8] sm:$0xff] %v543_v24 }
 0x190 PF: > { %s19_s17 = sadd.s32 1, %s749_s17  }
 0x191   : > { %p16_p4 = scmp.ge.s32.totalorder %s19_s17, 4  }
 0x193   :  { %18 = sbr.rel (!%p16_p4) target bundleno = 3 (0x3), region = 72 }

</bundles_post_ra>
